<compile_context>
chip_gen: v5e
topology: v5e:2x2
jax: 0.10.0
libtpu: 0.0.40
codegen_flags: <defaults>
</compile_context>

<pallas_src>
import jax
import jax.numpy as jnp
from jax import lax
from jax.experimental import pallas as pl
from jax.experimental.pallas import tpu as pltpu


def dct1_matrix(n: int) -> jnp.ndarray:
    """Non-normalized DCT-I matrix M such that scipy.fftpack.dct(x, type=1) == M @ x."""
    assert n >= 2, "DCT-I (type=1) requires length >= 2"
    k = jnp.arange(n, dtype=jnp.float32)[:, None]
    m = jnp.arange(n, dtype=jnp.float32)[None, :]
    w = jnp.where((jnp.arange(n) == 0) | (jnp.arange(n) == n - 1), 1.0, 2.0)
    return (w[None, :] * jnp.cos(jnp.pi * k * m / (n - 1))).astype(jnp.float32)


def _round_up(x: int, m: int) -> int:
    return -(-x // m) * m


def _make_kernel(bt: int, cinp: int, coutp: int, m2p: int):
    def kernel(x_ref, tfwd_ref, w_ref, tinv_ref, o_ref, xm_ref, y_ref):
        # x_ref    : (bt*cinp, S)        f32   input block (cast to bf16 in-kernel)
        # tfwd_ref : (S, m2p)            bf16  mode-truncated forward DCT-I (lane padded)
        # w_ref    : (cinp, coutp, m2p)  f32   compact spectral weights (zero padded)
        # tinv_ref : (m2p, S)            bf16  mode-truncated inverse DCT-I
        # o_ref    : (bt*coutp, S)       f32   output block
        # xm_ref   : (bt*cinp, m2p)      f32   scratch: forward-transformed modes
        # y_ref    : (bt*coutp, m2p)     f32   scratch: mixed modes

        # Forward transform: one big MXU matmul, M = bt*cinp rows, lane-dense N.
        xm_ref[...] = jnp.dot(x_ref[...].astype(jnp.bfloat16), tfwd_ref[...],
                              preferred_element_type=jnp.float32)

        # Per-mode channel mixing: y[b, o, m] = sum_i xm[b, i, m] * w[i, o, m].
        # Small carried f32 accumulator per batch element; one aligned store.
        def mix_one_batch(b, carry):
            x_base = b * cinp

            def accum(i, acc):
                row = xm_ref[pl.ds(x_base + i, 1), :]          # (1, m2p)
                return acc + row * w_ref[i]                    # (coutp, m2p)

            acc = lax.fori_loop(0, cinp, accum,
                                jnp.zeros((coutp, m2p), jnp.float32),
                                unroll=True)
            y_ref[pl.ds(pl.multiple_of(b * coutp, 8), coutp), :] = acc
            return carry

        lax.fori_loop(0, bt, mix_one_batch, 0)

        # Inverse transform back to space: second big MXU matmul.
        o_ref[...] = jnp.dot(y_ref[...].astype(jnp.bfloat16), tinv_ref[...],
                             preferred_element_type=jnp.float32)

    return kernel


def _vmem_bytes(bt: int, cinp: int, coutp: int, S: int, m2p: int) -> int:
    return (2 * bt * cinp * S * 4      # input block, double buffered (f32)
            + 2 * bt * coutp * S * 4   # output block, double buffered (f32)
            + S * m2p * 2              # tfwd, single buffered (bf16)
            + m2p * S * 2              # tinv, single buffered (bf16)
            + cinp * coutp * m2p * 4   # weights (f32)
            + bt * cinp * m2p * 4      # xm scratch (f32)
            + bt * coutp * m2p * 4)    # y scratch (f32)


def _pick_block_b(B: int, cinp: int, coutp: int, S: int, m2p: int, budget: int) -> int:
    """Batch elements per grid step, from an explicit VMEM byte budget."""
    divs = [d for d in range(1, B + 1) if B % d == 0]
    fits = [d for d in divs if _vmem_bytes(d, cinp, coutp, S, m2p) <= budget] or [1]
    # Fill MXU rows (first matmul M = bt*cinp); past ~512 rows there is no
    # extra MXU fill, only VMEM pressure.
    good = [d for d in fits if d * cinp <= 512] or [min(fits)]
    bt = max(good)
    # Multiple TensorCores (v7x) / megacore: prefer >=2 grid steps, but only
    # if each step still feeds >=128 MXU rows; otherwise the per-step overhead
    # and row underfill dominate (single-core v5e/v6e just keep the big block).
    if B // bt < 2:
        alts = [d for d in fits if B // d >= 2 and d * cinp >= 128]
        if alts:
            bt = max(alts)
    return bt


def spectral_conv2d(x, weights1, weights2, modes1, modes2, block_b=None):
    B, Cin, H, W = x.shape
    Cout = weights1.shape[1]
    S = H * W
    m1, m2 = int(modes1), int(modes2)
    M2 = 2 * m1 * m2

    assert H >= 2 and W >= 2, "DCT-I needs spatial dims >= 2"
    assert m2 <= W // 2 + 1, "modes2 must fit the (W//2+1)-wide spectral axis"
    # TODO(synk): if 2*modes1 > H the PyTorch reference silently overwrites the
    # overlapping rows with weights2; the fused transform here would sum them,
    # so only the non-overlapping regime is supported.
    assert 2 * m1 <= H, "2*modes1 must be <= H"

    # Padded sizes: lane-dense spectral axis, sublane-aligned channels.
    M2P = max(128, _round_up(M2, 128))
    CinP = _round_up(Cin, 8)
    CoutP = _round_up(Cout, 8)

    # DCT-I transforms restricted to the retained modes (flattened m = k*m2+l,
    # s = h*W + w), zero-padded on the spectral axis to M2P.
    DH = dct1_matrix(H)
    DW = dct1_matrix(W)
    IDH = DH / (2.0 * (H - 1))     # idct(type=1) == dct(type=1) / (2*(N-1))
    IDW = DW / (2.0 * (W - 1))
    rows = jnp.concatenate([jnp.arange(m1), jnp.arange(H - m1, H)])
    tfwd = jnp.kron(DH[rows, :].T, DW[:m2, :].T)        # (S, M2)
    tinv = jnp.kron(IDH[:, rows].T, IDW[:, :m2].T)      # (M2, S)
    tfwd_p = jnp.zeros((S, M2P), jnp.float32).at[:, :M2].set(tfwd).astype(jnp.bfloat16)
    tinv_p = jnp.zeros((M2P, S), jnp.float32).at[:M2, :].set(tinv).astype(jnp.bfloat16)

    # Compact spectral weights, zero-padded to (CinP, CoutP, M2P).  Padded
    # input channels / modes contribute zero; padded output channels are
    # sliced away at the end.
    w_c = jnp.concatenate([weights1, weights2], axis=2).reshape(Cin, Cout, M2)
    w_p = jnp.zeros((CinP, CoutP, M2P), jnp.float32)
    w_p = w_p.at[:Cin, :Cout, :M2].set(w_c.astype(jnp.float32))

    # Input stays f32 in HBM (no extra wrapper cast pass); channel pad only
    # when Cin is not already a multiple of 8 (small-channel regime).
    if CinP != Cin:
        x = jnp.pad(x, ((0, 0), (0, CinP - Cin), (0, 0), (0, 0)))
    x2d = x.astype(jnp.float32).reshape(B * CinP, S)

    # Generation-aware block choice / VMEM budget.
    try:
        vmem_cap = int(pltpu.get_tpu_info().vmem_capacity_bytes)
    except Exception:
        vmem_cap = 64 * 1024 * 1024           # v7x per-TC floor
    budget = int(vmem_cap * 0.7)              # headroom for Mosaic internals
    bt = int(block_b) if block_b is not None else _pick_block_b(
        B, CinP, CoutP, S, M2P, budget)
    assert B % bt == 0
    grid = (B // bt,)
    needed = _vmem_bytes(bt, CinP, CoutP, S, M2P)
    vmem_limit = int(min(max(32 * 1024 * 1024, needed + (16 << 20)), vmem_cap))

    const = pl.Buffered(1)   # grid-invariant operands: no double buffering

    out = pl.pallas_call(
        _make_kernel(bt, CinP, CoutP, M2P),
        out_shape=jax.ShapeDtypeStruct((B * CoutP, S), jnp.float32),
        grid_spec=pltpu.PrefetchScalarGridSpec(
            num_scalar_prefetch=0,
            grid=grid,
            in_specs=[
                pl.BlockSpec((bt * CinP, S), lambda b: (b, 0)),
                pl.BlockSpec((S, M2P), lambda b: (0, 0), pipeline_mode=const),
                pl.BlockSpec((CinP, CoutP, M2P), lambda b: (0, 0, 0), pipeline_mode=const),
                pl.BlockSpec((M2P, S), lambda b: (0, 0), pipeline_mode=const),
            ],
            out_specs=pl.BlockSpec((bt * CoutP, S), lambda b: (b, 0)),
            scratch_shapes=[
                pltpu.VMEM((bt * CinP, M2P), jnp.float32),   # forward modes
                pltpu.VMEM((bt * CoutP, M2P), jnp.float32),  # mixed modes
            ],
        ),
        compiler_params=pltpu.CompilerParams(
            dimension_semantics=("parallel",),
            vmem_limit_bytes=vmem_limit,
        ),
    )(x2d, tfwd_p, w_p, tinv_p)

    out = out.reshape(B, CoutP, H, W)
    return out[:, :Cout] if CoutP != Cout else out


def spectral_conv2d_reference(x, w1, w2, m1, m2):
    """Plain-JAX f32 replication of the PyTorch forward (dctn -> mode mixing -> idctn)."""
    B, Ci, H, W = x.shape
    Co = w1.shape[1]
    DH = dct1_matrix(H)
    DW = dct1_matrix(W)
    x_dct = jnp.einsum('kh,bchw,lw->bckl', DH, x, DW)
    out_ft = jnp.zeros((B, Co, H, W // 2 + 1), jnp.float32)
    out_ft = out_ft.at[:, :, :m1, :m2].set(
        jnp.einsum('bixy,ioxy->boxy', x_dct[:, :, :m1, :m2], w1))
    out_ft = out_ft.at[:, :, H - m1:, :m2].set(
        jnp.einsum('bixy,ioxy->boxy', x_dct[:, :, H - m1:, :m2], w2))
    y = jnp.concatenate(
        [out_ft, jnp.zeros((B, Co, H, W - (W // 2 + 1)), jnp.float32)], axis=-1)
    IDH = DH / (2.0 * (H - 1))
    IDW = DW / (2.0 * (W - 1))
    return jnp.einsum('kh,bohw,lw->bokl', IDH, y, IDW)


if __name__ == "__main__":
    B, Cin, Cout, H, W = 2, 4, 4, 16, 16
    modes1, modes2 = 6, 6

    key = jax.random.PRNGKey(0)
    kx, k1, k2 = jax.random.split(key, 3)
    x = jax.random.normal(kx, (B, Cin, H, W), dtype=jnp.float32)
    scale = 1.0 / (Cin * Cout)   # matches self.scale * torch.rand(...)
    weights1 = scale * jax.random.uniform(k1, (Cin, Cout, modes1, modes2), dtype=jnp.float32)
    weights2 = scale * jax.random.uniform(k2, (Cin, Cout, modes1, modes2), dtype=jnp.float32)

    out = spectral_conv2d(x, weights1, weights2, modes1, modes2)
    out = jax.block_until_ready(out)

    ref = spectral_conv2d_reference(x, weights1, weights2, modes1, modes2)
    assert out.shape == (B, Cout, H, W)
    max_err = float(jnp.max(jnp.abs(out - ref)))
    assert jnp.allclose(out, ref, rtol=1e-2, atol=1e-2), max_err
    print("KERNEL_OK")
</pallas_src>

<mosaic_0001>
module attributes {stable_mosaic.version = 11 : i64} {
  func.func @kernel(%arg0: i32, %arg1: memref<16x256xf32, #tpu.memory_space<vmem>>, %arg2: memref<256x128xbf16, #tpu.memory_space<vmem>>, %arg3: memref<8x8x128xf32, #tpu.memory_space<vmem>>, %arg4: memref<128x256xbf16, #tpu.memory_space<vmem>>, %arg5: memref<16x256xf32, #tpu.memory_space<vmem>>, %arg6: memref<16x128xf32, #tpu.memory_space<vmem>>, %arg7: memref<16x128xf32, #tpu.memory_space<vmem>>) attributes {dimension_semantics = [#tpu.dimension_semantics<parallel>], iteration_bounds = array<i64: 1>, scalar_prefetch = 0 : i64, scratch_operands = 2 : i64, tpu.core_type = #tpu.core_type<tc>, window_params = [{transform_indices = @transform_0, window_bounds = array<i64: 16, 256>}, {pipeline_mode = #tpu.pipeline_mode<synchronous>, transform_indices = @transform_1, window_bounds = array<i64: 256, 128>}, {pipeline_mode = #tpu.pipeline_mode<synchronous>, transform_indices = @transform_2, window_bounds = array<i64: 8, 8, 128>}, {pipeline_mode = #tpu.pipeline_mode<synchronous>, transform_indices = @transform_3, window_bounds = array<i64: 128, 256>}, {transform_indices = @transform_4, window_bounds = array<i64: 16, 256>}]} {
    %c0 = arith.constant 0 : index
    %c0_0 = arith.constant 0 : index
    %0 = vector.load %arg1[%c0, %c0_0] : memref<16x256xf32, #tpu.memory_space<vmem>>, vector<16x256xf32>
    %1 = arith.truncf %0 : vector<16x256xf32> to vector<16x256xbf16>
    %c0_1 = arith.constant 0 : index
    %c0_2 = arith.constant 0 : index
    %2 = vector.load %arg2[%c0_1, %c0_2] : memref<256x128xbf16, #tpu.memory_space<vmem>>, vector<256x128xbf16>
    %cst = arith.constant dense<0.000000e+00> : vector<16x128xf32>
    %3 = tpu.matmul %1, %2, %cst {dimension_numbers = #tpu.dot_dimension_numbers<[1], [0], [0], [1], [0, 0, 1, 1], [], []>} : vector<16x256xbf16>, vector<256x128xbf16>, vector<16x128xf32> -> vector<16x128xf32>
    %c0_3 = arith.constant 0 : index
    %c0_4 = arith.constant 0 : index
    %4 = vector.load %arg6[%c0_3, %c0_4] : memref<16x128xf32, #tpu.memory_space<vmem>>, vector<16x128xf32>
    tpu.vector_store %arg6[%c0_3, %c0_4], %3 {strides = array<i32>} : memref<16x128xf32, #tpu.memory_space<vmem>>, vector<16x128xf32>,
    %c0_i32 = arith.constant 0 : i32
    %c2_i32 = arith.constant 2 : i32
    %5 = arith.addi %c0_i32, %c2_i32 : i32
    %c1_i32 = arith.constant 1 : i32
    scf.for %arg8 = %c0_i32 to %5 step %c1_i32  : i32 {
      %c8_i32 = arith.constant 8 : i32
      %11 = arith.muli %arg8, %c8_i32 : i32
      %cst_13 = arith.constant 0.000000e+00 : f32
      %12 = vector.broadcast %cst_13 : f32 to vector<8x128xf32>
      %c0_i32_14 = arith.constant 0 : i32
      %13 = arith.addi %11, %c0_i32_14 : i32
      %14 = arith.index_cast %13 : i32 to index
      %c0_15 = arith.constant 0 : index
      %15 = vector.load %arg6[%14, %c0_15] : memref<16x128xf32, #tpu.memory_space<vmem>>, vector<1x128xf32>
      %16 = arith.index_cast %c0_i32_14 : i32 to index
      %c0_16 = arith.constant 0 : index
      %c0_17 = arith.constant 0 : index
      %17 = vector.load %arg3[%16, %c0_16, %c0_17] : memref<8x8x128xf32, #tpu.memory_space<vmem>>, vector<1x8x128xf32>
      %18 = vector.shape_cast %17 : vector<1x8x128xf32> to vector<8x128xf32>
      %19 = vector.broadcast %15 : vector<1x128xf32> to vector<8x128xf32>
      %20 = arith.mulf %19, %18 : vector<8x128xf32>
      %21 = arith.addf %12, %20 : vector<8x128xf32>
      %c1_i32_18 = arith.constant 1 : i32
      %22 = arith.addi %11, %c1_i32_18 : i32
      %23 = arith.index_cast %22 : i32 to index
      %c0_19 = arith.constant 0 : index
      %24 = vector.load %arg6[%23, %c0_19] : memref<16x128xf32, #tpu.memory_space<vmem>>, vector<1x128xf32>
      %25 = arith.index_cast %c1_i32_18 : i32 to index
      %c0_20 = arith.constant 0 : index
      %c0_21 = arith.constant 0 : index
      %26 = vector.load %arg3[%25, %c0_20, %c0_21] : memref<8x8x128xf32, #tpu.memory_space<vmem>>, vector<1x8x128xf32>
      %27 = vector.shape_cast %26 : vector<1x8x128xf32> to vector<8x128xf32>
      %28 = vector.broadcast %24 : vector<1x128xf32> to vector<8x128xf32>
      %29 = arith.mulf %28, %27 : vector<8x128xf32>
      %30 = arith.addf %21, %29 : vector<8x128xf32>
      %c2_i32_22 = arith.constant 2 : i32
      %31 = arith.addi %11, %c2_i32_22 : i32
      %32 = arith.index_cast %31 : i32 to index
      %c0_23 = arith.constant 0 : index
      %33 = vector.load %arg6[%32, %c0_23] : memref<16x128xf32, #tpu.memory_space<vmem>>, vector<1x128xf32>
      %34 = arith.index_cast %c2_i32_22 : i32 to index
      %c0_24 = arith.constant 0 : index
      %c0_25 = arith.constant 0 : index
      %35 = vector.load %arg3[%34, %c0_24, %c0_25] : memref<8x8x128xf32, #tpu.memory_space<vmem>>, vector<1x8x128xf32>
      %36 = vector.shape_cast %35 : vector<1x8x128xf32> to vector<8x128xf32>
      %37 = vector.broadcast %33 : vector<1x128xf32> to vector<8x128xf32>
      %38 = arith.mulf %37, %36 : vector<8x128xf32>
      %39 = arith.addf %30, %38 : vector<8x128xf32>
      %c3_i32 = arith.constant 3 : i32
      %40 = arith.addi %11, %c3_i32 : i32
      %41 = arith.index_cast %40 : i32 to index
      %c0_26 = arith.constant 0 : index
      %42 = vector.load %arg6[%41, %c0_26] : memref<16x128xf32, #tpu.memory_space<vmem>>, vector<1x128xf32>
      %43 = arith.index_cast %c3_i32 : i32 to index
      %c0_27 = arith.constant 0 : index
      %c0_28 = arith.constant 0 : index
      %44 = vector.load %arg3[%43, %c0_27, %c0_28] : memref<8x8x128xf32, #tpu.memory_space<vmem>>, vector<1x8x128xf32>
      %45 = vector.shape_cast %44 : vector<1x8x128xf32> to vector<8x128xf32>
      %46 = vector.broadcast %42 : vector<1x128xf32> to vector<8x128xf32>
      %47 = arith.mulf %46, %45 : vector<8x128xf32>
      %48 = arith.addf %39, %47 : vector<8x128xf32>
      %c4_i32 = arith.constant 4 : i32
      %49 = arith.addi %11, %c4_i32 : i32
      %50 = arith.index_cast %49 : i32 to index
      %c0_29 = arith.constant 0 : index
      %51 = vector.load %arg6[%50, %c0_29] : memref<16x128xf32, #tpu.memory_space<vmem>>, vector<1x128xf32>
      %52 = arith.index_cast %c4_i32 : i32 to index
      %c0_30 = arith.constant 0 : index
      %c0_31 = arith.constant 0 : index
      %53 = vector.load %arg3[%52, %c0_30, %c0_31] : memref<8x8x128xf32, #tpu.memory_space<vmem>>, vector<1x8x128xf32>
      %54 = vector.shape_cast %53 : vector<1x8x128xf32> to vector<8x128xf32>
      %55 = vector.broadcast %51 : vector<1x128xf32> to vector<8x128xf32>
      %56 = arith.mulf %55, %54 : vector<8x128xf32>
      %57 = arith.addf %48, %56 : vector<8x128xf32>
      %c5_i32 = arith.constant 5 : i32
      %58 = arith.addi %11, %c5_i32 : i32
      %59 = arith.index_cast %58 : i32 to index
      %c0_32 = arith.constant 0 : index
      %60 = vector.load %arg6[%59, %c0_32] : memref<16x128xf32, #tpu.memory_space<vmem>>, vector<1x128xf32>
      %61 = arith.index_cast %c5_i32 : i32 to index
      %c0_33 = arith.constant 0 : index
      %c0_34 = arith.constant 0 : index
      %62 = vector.load %arg3[%61, %c0_33, %c0_34] : memref<8x8x128xf32, #tpu.memory_space<vmem>>, vector<1x8x128xf32>
      %63 = vector.shape_cast %62 : vector<1x8x128xf32> to vector<8x128xf32>
      %64 = vector.broadcast %60 : vector<1x128xf32> to vector<8x128xf32>
      %65 = arith.mulf %64, %63 : vector<8x128xf32>
      %66 = arith.addf %57, %65 : vector<8x128xf32>
      %c6_i32 = arith.constant 6 : i32
      %67 = arith.addi %11, %c6_i32 : i32
      %68 = arith.index_cast %67 : i32 to index
      %c0_35 = arith.constant 0 : index
      %69 = vector.load %arg6[%68, %c0_35] : memref<16x128xf32, #tpu.memory_space<vmem>>, vector<1x128xf32>
      %70 = arith.index_cast %c6_i32 : i32 to index
      %c0_36 = arith.constant 0 : index
      %c0_37 = arith.constant 0 : index
      %71 = vector.load %arg3[%70, %c0_36, %c0_37] : memref<8x8x128xf32, #tpu.memory_space<vmem>>, vector<1x8x128xf32>
      %72 = vector.shape_cast %71 : vector<1x8x128xf32> to vector<8x128xf32>
      %73 = vector.broadcast %69 : vector<1x128xf32> to vector<8x128xf32>
      %74 = arith.mulf %73, %72 : vector<8x128xf32>
      %75 = arith.addf %66, %74 : vector<8x128xf32>
      %c7_i32 = arith.constant 7 : i32
      %76 = arith.addi %11, %c7_i32 : i32
      %77 = arith.index_cast %76 : i32 to index
      %c0_38 = arith.constant 0 : index
      %78 = vector.load %arg6[%77, %c0_38] : memref<16x128xf32, #tpu.memory_space<vmem>>, vector<1x128xf32>
      %79 = arith.index_cast %c7_i32 : i32 to index
      %c0_39 = arith.constant 0 : index
      %c0_40 = arith.constant 0 : index
      %80 = vector.load %arg3[%79, %c0_39, %c0_40] : memref<8x8x128xf32, #tpu.memory_space<vmem>>, vector<1x8x128xf32>
      %81 = vector.shape_cast %80 : vector<1x8x128xf32> to vector<8x128xf32>
      %82 = vector.broadcast %78 : vector<1x128xf32> to vector<8x128xf32>
      %83 = arith.mulf %82, %81 : vector<8x128xf32>
      %84 = arith.addf %75, %83 : vector<8x128xf32>
      %c8_i32_41 = arith.constant 8 : i32
      %c8_i32_42 = arith.constant 8 : i32
      %85 = arith.muli %arg8, %c8_i32_42 : i32
      %86 = tpu.assume_multiple %85, 8 : i32
      %87 = arith.index_cast %86 : i32 to index
      %c0_43 = arith.constant 0 : index
      %88 = vector.load %arg7[%87, %c0_43] : memref<16x128xf32, #tpu.memory_space<vmem>>, vector<8x128xf32>
      tpu.vector_store %arg7[%87, %c0_43], %84 {strides = array<i32>} : memref<16x128xf32, #tpu.memory_space<vmem>>, vector<8x128xf32>,
    }
    %c2_i32_5 = arith.constant 2 : i32
    %c0_6 = arith.constant 0 : index
    %c0_7 = arith.constant 0 : index
    %6 = vector.load %arg7[%c0_6, %c0_7] : memref<16x128xf32, #tpu.memory_space<vmem>>, vector<16x128xf32>
    %7 = arith.truncf %6 : vector<16x128xf32> to vector<16x128xbf16>
    %c0_8 = arith.constant 0 : index
    %c0_9 = arith.constant 0 : index
    %8 = vector.load %arg4[%c0_8, %c0_9] : memref<128x256xbf16, #tpu.memory_space<vmem>>, vector<128x256xbf16>
    %cst_10 = arith.constant dense<0.000000e+00> : vector<16x256xf32>
    %9 = tpu.matmul %7, %8, %cst_10 {dimension_numbers = #tpu.dot_dimension_numbers<[1], [0], [0], [1], [0, 0, 1, 1], [], []>} : vector<16x128xbf16>, vector<128x256xbf16>, vector<16x256xf32> -> vector<16x256xf32>
    %c0_11 = arith.constant 0 : index
    %c0_12 = arith.constant 0 : index
    %10 = vector.load %arg5[%c0_11, %c0_12] : memref<16x256xf32, #tpu.memory_space<vmem>>, vector<16x256xf32>
    tpu.vector_store %arg5[%c0_11, %c0_12], %9 {strides = array<i32>} : memref<16x256xf32, #tpu.memory_space<vmem>>, vector<16x256xf32>,
    return
  }
  func.func @transform_0(%arg0: i32) -> (i32, i32) {
    %c0_i32 = arith.constant 0 : i32
    %c0_i32_0 = arith.constant 0 : i32
    return %arg0, %c0_i32 : i32, i32
  }
  func.func @transform_1(%arg0: i32) -> (i32, i32) {
    %c0_i32 = arith.constant 0 : i32
    %c0_i32_0 = arith.constant 0 : i32
    %c0_i32_1 = arith.constant 0 : i32
    return %c0_i32, %c0_i32_0 : i32, i32
  }
  func.func @transform_2(%arg0: i32) -> (i32, i32, i32) {
    %c0_i32 = arith.constant 0 : i32
    %c0_i32_0 = arith.constant 0 : i32
    %c0_i32_1 = arith.constant 0 : i32
    %c0_i32_2 = arith.constant 0 : i32
    return %c0_i32, %c0_i32_0, %c0_i32_1 : i32, i32, i32
  }
  func.func @transform_3(%arg0: i32) -> (i32, i32) {
    %c0_i32 = arith.constant 0 : i32
    %c0_i32_0 = arith.constant 0 : i32
    %c0_i32_1 = arith.constant 0 : i32
    return %c0_i32, %c0_i32_0 : i32, i32
  }
  func.func @transform_4(%arg0: i32) -> (i32, i32) {
    %c0_i32 = arith.constant 0 : i32
    %c0_i32_0 = arith.constant 0 : i32
    return %arg0, %c0_i32 : i32, i32
  }
}

</mosaic_0001>

<bundles_post_ra>
// kernel: tpu_custom_call.1
= control target key start
LH: loop header
LB: loop body
LE: loop exit
PB: predicated region body
PF: predicated region fallthrough
CT: control target
= control target key end

     0   :  { %9 = vsyncpa [#allocation5], 0  ;;  %s906_s0 = inlined_call_operand.hbm [shape: f32[16,256], index: 0, kind: input, shape index: {}]   ;;  %s907_s1 = inlined_call_operand.hbm [shape: bf16[256,128], index: 1, kind: input, shape index: {}]   ;;  %s908_s2 = inlined_call_operand.hbm [shape: f32[8,8,128], index: 2, kind: input, shape index: {}]   ;;  %s909_s3 = inlined_call_operand.hbm [shape: bf16[128,256], index: 3, kind: input, shape index: {}]   ;;  %s910_s4 = inlined_call_operand.hbm [shape: f32[16,256], index: 4, kind: output, shape index: {}]  }
   0x1   :  { %10 = vsyncpa [#allocation8], 0 }
   0x2   :  { %11 = vsyncpa [#allocation11], 0  ;;  %s30_s17 = sshll.u32 %s907_s1, 4  ;;  %s31_s17 = int_to_ptr.hbm [resolvable:$true] %s30_s17 }
   0x3   :  { %12 = vsyncpa [#allocation6], 0  ;;  %s836_s18 = smov [#allocation7]   ;;  %s17_s22 = sshll.u32 %s906_s0, 4  ;;  %s18_s22 = int_to_ptr.hbm [resolvable:$true] %s17_s22 }
   0x4   :  { %s32_s19 = sshll.u32 %s836_s18, 4  ;;  %s837_s23 = smov 64   ;;  %s33_s19 = int_to_ptr.vmem [resolvable:$true] %s32_s19 }
   0x5   :  { %s838_s24 = smov 4   ;;  %s839_s25 = smov [#allocation4]  }
   0x6   :  { %38 = dma.hbm_to_vmem [thread:$0]  %s31_s17, 2048, %s33_s19, [#allocation8], %s837_s23, %s837_s23, %s838_s24  }
   0x7   :  { %s19_s26 = sshll.u32 %s839_s25, 4  ;;  %s840_s27 = smov 256   ;;  %s20_s26 = int_to_ptr.vmem [resolvable:$true] %s19_s26 }
   0x8   :  { %s841_s28 = smov 16   ;;  %s43_s30 = sshll.u32 %s908_s2, 4  ;;  %s44_s30 = int_to_ptr.hbm [resolvable:$true] %s43_s30 }
   0x9   :  { %25 = dma.hbm_to_vmem [thread:$0]  %s18_s22, 512, %s20_s26, [#allocation5], %s840_s27, %s840_s27, %s841_s28  }
   0xa   :  { %s842_s5 = smov [#allocation9]   ;;  %s56_s8 = sshll.u32 %s909_s3, 4  ;;  %s57_s8 = int_to_ptr.hbm [resolvable:$true] %s56_s8 }
   0xb   :  { %s45_s0 = sshll.u32 %s842_s5, 4  ;;  %s843_s9 = smov 128   ;;  %s46_s0 = int_to_ptr.vmem [resolvable:$true] %s45_s0 }
   0xc   :  { %s844_s10 = smov 8   ;;  %s845_s11 = smov [#allocation10]  }
   0xd   :  { %51 = dma.hbm_to_vmem [thread:$0]  %s44_s30, 1024, %s46_s0, [#allocation8], %s843_s9, %s843_s9, %s844_s10  }
   0xe   :  { %s58_s12 = sshll.u32 %s845_s11, 4  ;;  %s59_s12 = int_to_ptr.vmem [resolvable:$true] %s58_s12 }
   0xf   :  { %64 = dma.hbm_to_vmem [thread:$0]  %s57_s8, 2048, %s59_s12, [#allocation11], %s843_s9, %s843_s9, %s844_s10  }
  0x10   :  { %824 = dma.done.wait [#allocation5], 512  }
  0x11   :  { %825 = vsyncadd [#allocation5], 4294966784 }
  0x12   :  { %826 = dma.done.wait [#allocation8], 3072  }
  0x13   :  { %827 = vsyncadd [#allocation8], 4294964224 }
  0x14   :  { %828 = dma.done.wait [#allocation11], 2048  }
  0x15   :  { %829 = vsyncadd [#allocation11], 4294965248  ;;  %v648_v0 = vld [vmem:[#allocation7 + $0x38] sm:$0xff]  ;;  %v647_v2 = vld [vmem:[#allocation7 + $0x30] sm:$0xff]  ;;  %s887_s2 = smov 0  }
  0x16   :  { %v656_v1 = vld [vmem:[#allocation7 + $0x78] sm:$0xff]  ;;  %215 = vmatpush.bf16.msra.mxu0 %v648_v0  ;;  %v655_v3 = vld [vmem:[#allocation7 + $0x70] sm:$0xff]  ;;  %v646_v4 = vld [vmem:[#allocation7 + $0x28] sm:$0xff] }
  0x17   :  { %229 = vmatpush.bf16.msra.mxu1 %v656_v1  ;;  %v654_v5 = vld [vmem:[#allocation7 + $0x68] sm:$0xff]  ;;  %v645_v6 = vld [vmem:[#allocation7 + $0x20] sm:$0xff]  ;;  %v644_v8 = vld [vmem:[#allocation7 + $0x18] sm:$0xff] }
  0x18   :  { %v653_v7 = vld [vmem:[#allocation7 + $0x60] sm:$0xff]  ;;  %v652_v9 = vld [vmem:[#allocation7 + $0x58] sm:$0xff]  ;;  %v643_v10 = vld [vmem:[#allocation7 + $0x10] sm:$0xff] }
  0x19   :  { %v651_v11 = vld [vmem:[#allocation7 + $0x50] sm:$0xff]  ;;  %v642_v12 = vld [vmem:[#allocation7 + $0x8] sm:$0xff]  ;;  %v641_v14 = vld [vmem:[#allocation7] sm:$0xff] }
  0x1a   :  { %216 = vmatpush.bf16.msra.mxu0 %v647_v2  ;;  %v650_v13 = vld [vmem:[#allocation7 + $0x48] sm:$0xff]  ;;  %v649_v15 = vld [vmem:[#allocation7 + $0x40] sm:$0xff]  ;;  %v83_v17 = vld [vmem:[#allocation4 + $0x10] sm:$0xff] }
  0x1b   :  { %230 = vmatpush.bf16.msra.mxu1 %v655_v3  ;;  %v81_v16 = vld [vmem:[#allocation4] sm:$0xff]  ;;  %v82_v18 = vld [vmem:[#allocation4 + $0x8] sm:$0xff]  ;;  %v84_v19 = vld [vmem:[#allocation4 + $0x18] sm:$0xff] }
  0x1c   :  { %v85_v20 = vpack.c.bf16 %v83_v17, %v81_v16  ;;  %v86_v21 = vpack.c.bf16 %v84_v19, %v82_v18 }
  0x1e   :  { %217 = vmatpush.bf16.msra.mxu0 %v646_v4 }
  0x1f   :  { %231 = vmatpush.bf16.msra.mxu1 %v654_v5 }
  0x22   :  { %218 = vmatpush.bf16.msra.mxu0 %v645_v6 }
  0x23   :  { %232 = vmatpush.bf16.msra.mxu1 %v653_v7 }
  0x26   :  { %219 = vmatpush.bf16.msra.mxu0 %v644_v8 }
  0x27   :  { %233 = vmatpush.bf16.msra.mxu1 %v652_v9 }
  0x2a   :  { %220 = vmatpush.bf16.msra.mxu0 %v643_v10 }
  0x2b   :  { %234 = vmatpush.bf16.msra.mxu1 %v651_v11 }
  0x2e   :  { %221 = vmatpush.bf16.msra.mxu0 %v642_v12 }
  0x2f   :  { %235 = vmatpush.bf16.msra.mxu1 %v650_v13 }
  0x32   :  { %222 = vmatpush.bf16.msra.mxu0 %v641_v14 }
  0x33   :  { %236 = vmatpush.bf16.msra.mxu1 %v649_v15 }
  0x35   :  { %223 = vmatmul.bf16.vlgmr.msra.gmra.mxu0 %v85_v20 }
  0x36   :  { %237 = vmatmul.bf16.vlgmr.msra.gmra.mxu1 %v86_v21 }
  0xb2   :  { %v224_v22 = vpop.f32.mrf.mxu0 }
  0xb3   :  { %v238_v23 = vpop.f32.mrf.mxu1 }
  0xb4   :  { %v239_v24 = vadd.f32 %v238_v23, %v224_v22 }
  0xb6   :  { %243 = vst [vmem:[#allocation2] sm:$0xff] %v239_v24 }
  0xba   :  { %v226_v25 = vpop.f32.mrf.mxu0 }
  0xbb   :  { %v240_v26 = vpop.f32.mrf.mxu1 }
  0xbc   :  { %v241_v27 = vadd.f32 %v240_v26, %v226_v25 }
  0xbe   :  { %244 = vst [vmem:[#allocation2 + $0x8] sm:$0xff] %v241_v27 }
  0xbf LB: > { %s562_s3 = sshll.u32 %s834_s2, 3  ;;  %v254_v28 = vld [vmem:[#allocation9] sm:$0xff]  ;;  %v262_v29 = vld [vmem:[#allocation9 + $0x8] sm:$0xff]  ;;  %v270_v30 = vld [vmem:[#allocation9 + $0x10] sm:$0xff]  ;;  %s250_s2 = sadd.s32 1, %s834_s2   ;;  %s834_s2 = sphi %s887_s2, %s250_s2  }
  0xc0   : > { %s252_s13 = scalar_lea.vmem [#allocation2], %s562_s3  ;;  %v278_v32 = vld [vmem:[#allocation9 + $0x18] sm:$0xff]  ;;  %v286_v40 = vld [vmem:[#allocation9 + $0x20] sm:$0xff]  ;;  %v294_v44 = vld [vmem:[#allocation9 + $0x28] sm:$0xff]  ;;  %s314_s14 = scalar_lea.vmem [#allocation3], %s562_s3 }
  0xc1   : > { %v302_v48 = vld [vmem:[#allocation9 + $0x30] sm:$0xff]  ;;  %v310_v52 = vld [vmem:[#allocation9 + $0x38] sm:$0xff]  ;;  %p247_p0 = scmp.ge.s32.totalorder %s250_s2, 2  }
  0xc2   :  { %v635_v59 = vld [vmem:[#allocation10 + $0x70] sm:$0xf] (%p247_p0)  ;;  %v672_v60 = vld [vmem:[#allocation10 + $0x74] sm:$0xf0] (%p247_p0)  ;;  %v671_v61 = vld [vmem:[#allocation10 + $0x74] sm:$0xf] (%p247_p0) }
  0xc3   :  { %v636_v62 = vor.u32 (%p247_p0), %v672_v60, %v635_v59  ;;  %v637_v63 = vld [vmem:[#allocation10 + $0x78] sm:$0xf0] (%p247_p0)  ;;  %v627_v0 = vld [vmem:[#allocation10 + $0x60] sm:$0xf] (%p247_p0)  ;;  %v670_v1 = vld [vmem:[#allocation10 + $0x64] sm:$0xf0] (%p247_p0) }
  0xc4   :  { %v640_v2 = vor.u32 (%p247_p0), %v671_v61, %v637_v63  ;;  %v669_v3 = vld [vmem:[#allocation10 + $0x64] sm:$0xf] (%p247_p0)  ;;  %v629_v4 = vld [vmem:[#allocation10 + $0x68] sm:$0xf0] (%p247_p0)  ;;  %v628_v5 = vor.u32 (%p247_p0), %v670_v1, %v627_v0  ;;  %v619_v7 = vld [vmem:[#allocation10 + $0x50] sm:$0xf] (%p247_p0) }
  0xc5   : > { %v692_v31 = vld [vmem:[%s252_s13] ss:$0 sm:$0xff]  ;;  %v693_v33 = vld [vmem:[%s252_s13 + $0x1] ss:$0 sm:$0xff]  ;;  %v694_v34 = vld [vmem:[%s252_s13 + $0x2] ss:$0 sm:$0xff]  ;;  %415 = vmatpush.bf16.msra.mxu2 (%p247_p0), %v636_v62  ;;  %v632_v6 = vor.u32 (%p247_p0), %v669_v3, %v629_v4 }
  0xc6   : > { %v256_v35 = vmul.f32 %v692_v31, %v254_v28  ;;  %v695_v36 = vld [vmem:[%s252_s13 + $0x3] ss:$0 sm:$0xff]  ;;  %v264_v37 = vmul.f32 %v693_v33, %v262_v29  ;;  %v272_v38 = vmul.f32 %v694_v34, %v270_v30  ;;  %v696_v39 = vld [vmem:[%s252_s13 + $0x4] ss:$0 sm:$0xff]  ;;  %v697_v43 = vld [vmem:[%s252_s13 + $0x5] ss:$0 sm:$0xff]  ;;  %429 = vmatpush.bf16.msra.mxu3 (%p247_p0), %v640_v2 }
  0xc7   : > { %v280_v42 = vmul.f32 %v695_v36, %v278_v32  ;;  %v288_v46 = vmul.f32 %v696_v39, %v286_v40  ;;  %v698_v47 = vld [vmem:[%s252_s13 + $0x6] ss:$0 sm:$0xff]  ;;  %v296_v50 = vmul.f32 %v697_v43, %v294_v44  ;;  %v699_v51 = vld [vmem:[%s252_s13 + $0x7] ss:$0 sm:$0xff]  ;;  %v668_v8 = vld [vmem:[#allocation10 + $0x54] sm:$0xf0] (%p247_p0) }
  0xc8   : > { %v265_v41 = vadd.f32 %v264_v37, %v256_v35  ;;  %v304_v54 = vmul.f32 %v698_v47, %v302_v48  ;;  %v312_v56 = vmul.f32 %v699_v51, %v310_v52  ;;  %v667_v9 = vld [vmem:[#allocation10 + $0x54] sm:$0xf] (%p247_p0)  ;;  %v621_v10 = vld [vmem:[#allocation10 + $0x58] sm:$0xf0] (%p247_p0)  ;;  %v620_v11 = vor.u32 (%p247_p0), %v668_v8, %v619_v7  ;;  %v611_v13 = vld [vmem:[#allocation10 + $0x40] sm:$0xf] (%p247_p0) }
  0xc9   :  { %416 = vmatpush.bf16.msra.mxu2 (%p247_p0), %v628_v5  ;;  %v624_v12 = vor.u32 (%p247_p0), %v667_v9, %v621_v10  ;;  %v666_v14 = vld [vmem:[#allocation10 + $0x44] sm:$0xf0] (%p247_p0)  ;;  %v665_v15 = vld [vmem:[#allocation10 + $0x44] sm:$0xf] (%p247_p0)  ;;  %v613_v16 = vld [vmem:[#allocation10 + $0x48] sm:$0xf0] (%p247_p0) }
  0xca   : > { %v273_v45 = vadd.f32 %v272_v38, %v265_v41  ;;  %430 = vmatpush.bf16.msra.mxu3 (%p247_p0), %v632_v6  ;;  %v612_v17 = vor.u32 (%p247_p0), %v666_v14, %v611_v13  ;;  %v616_v18 = vor.u32 (%p247_p0), %v665_v15, %v613_v16  ;;  %v603_v19 = vld [vmem:[#allocation10 + $0x30] sm:$0xf] (%p247_p0)  ;;  %v664_v20 = vld [vmem:[#allocation10 + $0x34] sm:$0xf0] (%p247_p0)  ;;  %v663_v21 = vld [vmem:[#allocation10 + $0x34] sm:$0xf] (%p247_p0) }
  0xcb   :  { %v605_v22 = vld [vmem:[#allocation10 + $0x38] sm:$0xf0] (%p247_p0)  ;;  %v604_v23 = vor.u32 (%p247_p0), %v664_v20, %v603_v19  ;;  %v595_v25 = vld [vmem:[#allocation10 + $0x20] sm:$0xf] (%p247_p0)  ;;  %v662_v26 = vld [vmem:[#allocation10 + $0x24] sm:$0xf0] (%p247_p0) }
  0xcc   : > { %v281_v49 = vadd.f32 %v280_v42, %v273_v45  ;;  %v608_v24 = vor.u32 (%p247_p0), %v663_v21, %v605_v22  ;;  %v661_v27 = vld [vmem:[#allocation10 + $0x24] sm:$0xf] (%p247_p0)  ;;  %v597_v28 = vld [vmem:[#allocation10 + $0x28] sm:$0xf0] (%p247_p0)  ;;  %v596_v29 = vor.u32 (%p247_p0), %v662_v26, %v595_v25  ;;  %v587_v31 = vld [vmem:[#allocation10 + $0x10] sm:$0xf] (%p247_p0) }
  0xcd   :  { %417 = vmatpush.bf16.msra.mxu2 (%p247_p0), %v620_v11  ;;  %v600_v30 = vor.u32 (%p247_p0), %v661_v27, %v597_v28  ;;  %v660_v32 = vld [vmem:[#allocation10 + $0x14] sm:$0xf0] (%p247_p0)  ;;  %v659_v33 = vld [vmem:[#allocation10 + $0x14] sm:$0xf] (%p247_p0)  ;;  %v589_v34 = vld [vmem:[#allocation10 + $0x18] sm:$0xf0] (%p247_p0) }
  0xce   : > { %v289_v53 = vadd.f32 %v288_v46, %v281_v49  ;;  %431 = vmatpush.bf16.msra.mxu3 (%p247_p0), %v624_v12  ;;  %v588_v35 = vor.u32 (%p247_p0), %v660_v32, %v587_v31  ;;  %v592_v36 = vor.u32 (%p247_p0), %v659_v33, %v589_v34  ;;  %v579_v37 = vld [vmem:[#allocation10] sm:$0xf] (%p247_p0)  ;;  %v658_v38 = vld [vmem:[#allocation10 + $0x4] sm:$0xf0] (%p247_p0)  ;;  %v657_v39 = vld [vmem:[#allocation10 + $0x4] sm:$0xf] (%p247_p0) }
  0xcf   :  { %v581_v40 = vld [vmem:[#allocation10 + $0x8] sm:$0xf0] (%p247_p0)  ;;  %v580_v41 = vor.u32 (%p247_p0), %v658_v38, %v579_v37  ;;  %s846_s15 = smov (%p247_p0), [#allocation12]   ;;  %s453_s19 = sshll.u32 (%p247_p0), %s910_s4, 4  ;;  %s454_s19 = int_to_ptr.hbm [resolvable:$true] %s453_s19 }
  0xd0   : > { %v297_v55 = vadd.f32 %v296_v50, %v289_v53  ;;  %v584_v44 = vor.u32 (%p247_p0), %v657_v39, %v581_v40  ;;  %s451_s16 = sshll.u32 (%p247_p0), %s846_s15, 4  ;;  %s452_s16 = int_to_ptr.vmem [resolvable:$true] %s451_s16 }
  0xd1   :  { %418 = vmatpush.bf16.msra.mxu2 (%p247_p0), %v612_v17 }
  0xd2   : > { %v305_v57 = vadd.f32 %v304_v54, %v297_v55  ;;  %249 = sbr.rel (!%p247_p0) target bundleno = 191 (0xbf), region = 75  ;;  %432 = vmatpush.bf16.msra.mxu3 (%p247_p0), %v616_v18 }
  0xd4   : > { %v313_v58 = vadd.f32 %v312_v56, %v305_v57 }
  0xd5   :  { %419 = vmatpush.bf16.msra.mxu2 (%p247_p0), %v604_v23 }
  0xd6   : > { %315 = vst [vmem:[%s314_s14] sm:$0xff] %v313_v58  ;;  %433 = vmatpush.bf16.msra.mxu3 (%p247_p0), %v608_v24 }
  0xd9   :  { %420 = vmatpush.bf16.msra.mxu2 %v596_v29 }
  0xda   :  { %434 = vmatpush.bf16.msra.mxu3 %v600_v30 }
  0xdd   :  { %421 = vmatpush.bf16.msra.mxu2 %v588_v35  ;;  %v316_v42 = vld [vmem:[#allocation3] sm:$0xff]  ;;  %v317_v43 = vld [vmem:[#allocation3 + $0x8] sm:$0xff] }
  0xde   :  { %435 = vmatpush.bf16.msra.mxu3 %v592_v36  ;;  %v318_v45 = vpack.c.bf16 %v317_v43, %v316_v42 }
  0xe1   :  { %422 = vmatpush.bf16.msra.mxu2 %v580_v41 }
  0xe2   :  { %436 = vmatpush.bf16.msra.mxu3 %v584_v44 }
  0xe4   :  { %423 = vmatmul.bf16.vlgmr.msra.gmra.mxu2 %v318_v45 }
  0xe5   :  { %437 = vmatmul.bf16.vlgmr.msra.gmra.mxu3 %v318_v45 }
 0x167   :  { %v424_v46 = vpop.f32.mrf.mxu2 }
 0x168   :  { %443 = vst [vmem:[#allocation12] sm:$0xff] %v424_v46  ;;  %v438_v47 = vpop.f32.mrf.mxu3 }
 0x169   :  { %444 = vst [vmem:[#allocation12 + $0x8] sm:$0xff] %v438_v47 }
 0x16f   :  { %v426_v48 = vpop.f32.mrf.mxu2 }
 0x170   :  { %445 = vst [vmem:[#allocation12 + $0x10] sm:$0xff] %v426_v48  ;;  %v440_v49 = vpop.f32.mrf.mxu3 }
 0x171   :  { %446 = vst [vmem:[#allocation12 + $0x18] sm:$0xff] %v440_v49 }
 0x172   :  { %459 = dma.vmem_to_hbm [thread:$0]  %s452_s16, 512, %s454_s19, [#allocation6], %s840_s27, %s840_s27, %s841_s28  }
 0x173   :  { %830 = dma.done.wait [#allocation6], 512  }
 0x174   :  { %831 = vsyncadd [#allocation6], 4294966784 }
 0x175   :  { %464 = vsyncpa [#allocation5], 1 }
 0x176   :  { %465 = vsyncpa [#allocation8], 1 }
 0x177   :  { %466 = vsyncpa [#allocation11], 1 }
 0x178   :  { %467 = vsyncpa [#allocation6], 1 }

</bundles_post_ra>
